<compile_context>
chip_gen: v5e
topology: v5e:2x2
jax: 0.10.0
libtpu: 0.0.40
codegen_flags: <defaults>
</compile_context>

<pallas_src>
import functools

import jax
import jax.numpy as jnp
from jax.experimental import pallas as pl
from jax.experimental.pallas import tpu as pltpu

HW = 361   # 19 * 19
NT = 10    # number of templates

_BLOCK_BYTES_BUDGET = 4 * 1024 * 1024   # per x-block; pipeline double-buffers it
_MAX_BATCH_TILE = 32                    # cap on the unrolled per-batch epilogue


def _d_kernel_fused(x_ref, tpl_ref, d_ref, *, bt, c):
    """x_ref: (bt*c, 361) f32; tpl_ref: (10, 361) f32; d_ref: (bt, 10, 10) f32."""
    tpl = tpl_ref[...]                                          # (10, 361)
    # One MXU contraction over the shared lane axis (K = 361) for the whole
    # batch tile: P[r, t] = sum_p x[r, p] * T[t, p]  (trans_b matmul, no
    # template transpose / XLU shuffle).
    p_all = jax.lax.dot_general(
        x_ref[...], tpl, dimension_numbers=(((1,), (1,)), ((), ())),
        preferred_element_type=jnp.float32)                     # (bt*c, 10)
    # Tiny per-batch epilogue: center over channels (identical to centering x
    # over C before projecting), then the (10, 10) Gram.
    for i in range(bt):
        p = p_all[i * c:(i + 1) * c, :]                         # (c, 10)
        pc = p - jnp.mean(p, axis=0, keepdims=True)
        d_ref[i] = jax.lax.dot_general(
            pc, pc, dimension_numbers=(((0,), (0,)), ((), ())),
            preferred_element_type=jnp.float32)                 # (10, 10)


def _d_kernel_loop(x_ref, tpl_ref, d_ref):
    """Fallback: x_ref (bt, C, 361); per-batch 2-D matmuls (always layout-legal)."""
    tpl = tpl_ref[...]                                          # (10, 361)
    for i in range(x_ref.shape[0]):
        p = jax.lax.dot_general(
            x_ref[i], tpl, dimension_numbers=(((1,), (1,)), ((), ())),
            preferred_element_type=jnp.float32)                 # (C, 10)
        pc = p - jnp.mean(p, axis=0, keepdims=True)
        d_ref[i] = jax.lax.dot_general(
            pc, pc, dimension_numbers=(((0,), (0,)), ((), ())),
            preferred_element_type=jnp.float32)


def _pick_batch_tile(batch, channels):
    """Largest divisor of `batch` whose x-block fits the VMEM budget."""
    bytes_per_batch = channels * HW * 4
    max_bt = min(batch, _MAX_BATCH_TILE,
                 max(1, _BLOCK_BYTES_BUDGET // max(bytes_per_batch, 1)))
    for bt in range(max_bt, 0, -1):
        if batch % bt == 0:
            return bt
    return 1


def _compute_d(xf, tpl):
    """xf: (B, C, 361) f32, tpl: (10, 361) f32 -> D: (B, 10, 10) f32."""
    B, C, _ = xf.shape
    bt = _pick_batch_tile(B, C)
    # Fused path flattens the tile to (bt*C, 361); legal iff the block covers
    # all rows (block == full array dim) or bt*C is a multiple of 8 (sublane).
    fused_ok = (bt == B) or ((bt * C) % 8 == 0)
    if fused_ok:
        kernel = functools.partial(_d_kernel_fused, bt=bt, c=C)
        x_arg = xf.reshape(B * C, HW)            # free HBM-level reshape (XLA)
        x_spec = pl.BlockSpec((bt * C, HW), lambda b: (b, 0))
    else:
        kernel = _d_kernel_loop
        x_arg = xf
        x_spec = pl.BlockSpec((bt, C, HW), lambda b: (b, 0, 0))

    return pl.pallas_call(
        kernel,
        out_shape=jax.ShapeDtypeStruct((B, NT, NT), jnp.float32),
        grid_spec=pltpu.PrefetchScalarGridSpec(
            num_scalar_prefetch=0,
            grid=(B // bt,),
            in_specs=[x_spec,
                      pl.BlockSpec((NT, HW), lambda b: (0, 0))],
            out_specs=pl.BlockSpec((bt, NT, NT), lambda b: (b, 0, 0)),
        ),
        compiler_params=pltpu.CompilerParams(
            dimension_semantics=("parallel",)),
    )(x_arg, tpl)


def pca_template_map(x, templates):
    """x: (B, C, 19, 19) NCHW; templates: any shape with 10*361 elements.

    Returns (mask (B, 1, 19, 19), v (B, 10)) -- same as the PyTorch module.
    """
    B, C, H, W = x.shape
    assert H * W == HW, "spatial dims must flatten to 361 (19x19)"
    xf = x.reshape(B, C, HW).astype(jnp.float32)
    tpl = templates.reshape(NT, HW).astype(jnp.float32)

    # --- Pallas kernel: per-batch projected, centered Gram matrix D ---
    d = _compute_d(xf, tpl)                                   # (B, 10, 10)

    # TODO(synk): torch.symeig has no Pallas equivalent; XLA's eigh uses the
    # same ascending-eigenvalue convention (eigenvector sign is arbitrary in
    # both frameworks).
    _, eigvec = jnp.linalg.eigh(d)                            # (B, 10, 10)
    v = eigvec[:, :, NT - 1]                                  # (B, 10) largest eig

    # mask = v @ templates: a (B,10)@(10,361) matmul is cheaper than a second
    # Pallas dispatch; XLA fuses it with the eigh epilogue and the reshape.
    mask = jnp.einsum('bt,tp->bp', v, tpl).reshape(B, 1, H, W)
    return mask, v


if __name__ == "__main__":
    key = jax.random.PRNGKey(0)
    k1, k2 = jax.random.split(key)
    # Small shapes consistent with the forward: spatial must be 19x19 (=361).
    x = jax.random.normal(k1, (2, 4, 19, 19), dtype=jnp.float32)
    templates = jax.random.normal(k2, (10, 19, 19), dtype=jnp.float32)

    mask, v = jax.jit(pca_template_map)(x, templates)
    jax.block_until_ready((mask, v))

    # Tolerance-based reference check of D against the direct
    # (covariance-then-project) formulation of the PyTorch module.
    B, C = 2, 4
    xf = x.reshape(B, C, HW).astype(jnp.float32)
    tpl = templates.reshape(NT, HW).astype(jnp.float32)
    d_pal = _compute_d(xf, tpl)
    fe = jnp.transpose(xf, (0, 2, 1))                         # (B, 361, C)
    fd = fe - jnp.mean(fe, axis=2, keepdims=True)
    cov = jnp.einsum('bpc,bqc->bpq', fd, fd)                  # (B, 361, 361)
    d_dir = jnp.einsum('tp,bpq,sq->bts', tpl, cov, tpl)       # (B, 10, 10)
    rel_err = jnp.max(jnp.abs(d_pal - d_dir)) / (jnp.max(jnp.abs(d_dir)) + 1e-6)
    assert float(rel_err) < 1e-3, f"D mismatch, rel err {float(rel_err)}"

    assert mask.shape == (2, 1, 19, 19) and mask.dtype == jnp.float32
    assert v.shape == (2, 10) and v.dtype == jnp.float32
    assert bool(jnp.all(jnp.isfinite(mask))) and bool(jnp.all(jnp.isfinite(v)))
    print("KERNEL_OK")
</pallas_src>

<mosaic_0001>
module attributes {stable_mosaic.version = 11 : i64} {
  func.func @_d_kernel_fused(%arg0: i32, %arg1: memref<8x361xf32, #tpu.memory_space<vmem>>, %arg2: memref<10x361xf32, #tpu.memory_space<vmem>>, %arg3: memref<2x10x10xf32, #tpu.memory_space<vmem>>) attributes {dimension_semantics = [#tpu.dimension_semantics<parallel>], iteration_bounds = array<i64: 1>, scalar_prefetch = 0 : i64, scratch_operands = 0 : i64, tpu.core_type = #tpu.core_type<tc>, window_params = [{transform_indices = @transform_0, window_bounds = array<i64: 8, 361>}, {pipeline_mode = #tpu.pipeline_mode<synchronous>, transform_indices = @transform_1, window_bounds = array<i64: 10, 361>}, {transform_indices = @transform_2, window_bounds = array<i64: 2, 10, 10>}]} {
    %c0 = arith.constant 0 : index
    %c0_0 = arith.constant 0 : index
    %0 = vector.load %arg2[%c0, %c0_0] : memref<10x361xf32, #tpu.memory_space<vmem>>, vector<10x361xf32>
    %c0_1 = arith.constant 0 : index
    %c0_2 = arith.constant 0 : index
    %1 = vector.load %arg1[%c0_1, %c0_2] : memref<8x361xf32, #tpu.memory_space<vmem>>, vector<8x361xf32>
    %cst = arith.constant dense<0.000000e+00> : vector<8x10xf32>
    %2 = tpu.matmul %1, %0, %cst {dimension_numbers = #tpu.dot_dimension_numbers<[1], [1], [0], [0], [0, 0, 1, 0], [], []>} : vector<8x361xf32>, vector<10x361xf32>, vector<8x10xf32> -> vector<8x10xf32>
    %3 = vector.extract_strided_slice %2 {offsets = [0, 0], sizes = [4, 10], strides = [1, 1]} : vector<8x10xf32> to vector<4x10xf32>
    %cst_3 = arith.constant dense<0.000000e+00> : vector<10xf32>
    %4 = vector.multi_reduction <add>, %3, %cst_3 [0] : vector<4x10xf32> to vector<10xf32>
    %5 = vector.shape_cast %4 : vector<10xf32> to vector<1x10xf32>
    %cst_4 = arith.constant 4.000000e+00 : f32
    %6 = vector.broadcast %cst_4 : f32 to vector<1x10xf32>
    %7 = arith.divf %5, %6 : vector<1x10xf32>
    %8 = vector.broadcast %7 : vector<1x10xf32> to vector<4x10xf32>
    %9 = arith.subf %3, %8 : vector<4x10xf32>
    %cst_5 = arith.constant dense<0.000000e+00> : vector<10x10xf32>
    %10 = tpu.matmul %9, %9, %cst_5 {dimension_numbers = #tpu.dot_dimension_numbers<[0], [0], [1], [1], [0, 1, 1, 1], [], []>} : vector<4x10xf32>, vector<4x10xf32>, vector<10x10xf32> -> vector<10x10xf32>
    %c0_6 = arith.constant 0 : index
    %c0_7 = arith.constant 0 : index
    %c0_8 = arith.constant 0 : index
    %11 = vector.load %arg3[%c0_6, %c0_7, %c0_8] : memref<2x10x10xf32, #tpu.memory_space<vmem>>, vector<1x10x10xf32>
    %12 = vector.shape_cast %11 : vector<1x10x10xf32> to vector<10x10xf32>
    %13 = vector.shape_cast %10 : vector<10x10xf32> to vector<1x10x10xf32>
    tpu.vector_store %arg3[%c0_6, %c0_7, %c0_8], %13 {strides = array<i32>} : memref<2x10x10xf32, #tpu.memory_space<vmem>>, vector<1x10x10xf32>,
    %14 = vector.extract_strided_slice %2 {offsets = [4, 0], sizes = [4, 10], strides = [1, 1]} : vector<8x10xf32> to vector<4x10xf32>
    %cst_9 = arith.constant dense<0.000000e+00> : vector<10xf32>
    %15 = vector.multi_reduction <add>, %14, %cst_9 [0] : vector<4x10xf32> to vector<10xf32>
    %16 = vector.shape_cast %15 : vector<10xf32> to vector<1x10xf32>
    %cst_10 = arith.constant 4.000000e+00 : f32
    %17 = vector.broadcast %cst_10 : f32 to vector<1x10xf32>
    %18 = arith.divf %16, %17 : vector<1x10xf32>
    %19 = vector.broadcast %18 : vector<1x10xf32> to vector<4x10xf32>
    %20 = arith.subf %14, %19 : vector<4x10xf32>
    %cst_11 = arith.constant dense<0.000000e+00> : vector<10x10xf32>
    %21 = tpu.matmul %20, %20, %cst_11 {dimension_numbers = #tpu.dot_dimension_numbers<[0], [0], [1], [1], [0, 1, 1, 1], [], []>} : vector<4x10xf32>, vector<4x10xf32>, vector<10x10xf32> -> vector<10x10xf32>
    %c1 = arith.constant 1 : index
    %c0_12 = arith.constant 0 : index
    %c0_13 = arith.constant 0 : index
    %22 = vector.load %arg3[%c1, %c0_12, %c0_13] : memref<2x10x10xf32, #tpu.memory_space<vmem>>, vector<1x10x10xf32>
    %23 = vector.shape_cast %22 : vector<1x10x10xf32> to vector<10x10xf32>
    %24 = vector.shape_cast %21 : vector<10x10xf32> to vector<1x10x10xf32>
    tpu.vector_store %arg3[%c1, %c0_12, %c0_13], %24 {strides = array<i32>} : memref<2x10x10xf32, #tpu.memory_space<vmem>>, vector<1x10x10xf32>,
    return
  }
  func.func @transform_0(%arg0: i32) -> (i32, i32) {
    %c0_i32 = arith.constant 0 : i32
    %c0_i32_0 = arith.constant 0 : i32
    return %arg0, %c0_i32 : i32, i32
  }
  func.func @transform_1(%arg0: i32) -> (i32, i32) {
    %c0_i32 = arith.constant 0 : i32
    %c0_i32_0 = arith.constant 0 : i32
    %c0_i32_1 = arith.constant 0 : i32
    return %c0_i32, %c0_i32_0 : i32, i32
  }
  func.func @transform_2(%arg0: i32) -> (i32, i32, i32) {
    %c0_i32 = arith.constant 0 : i32
    %c0_i32_0 = arith.constant 0 : i32
    %c0_i32_1 = arith.constant 0 : i32
    return %arg0, %c0_i32, %c0_i32_0 : i32, i32, i32
  }
}

</mosaic_0001>

<bundles_post_ra>
// kernel: custom-call.2
= control target key start
LH: loop header
LB: loop body
LE: loop exit
PB: predicated region body
PF: predicated region fallthrough
CT: control target
= control target key end

     0   :  { %s1724_s30 = smov 0   ;;  %s1726_s10 = smov 0   ;;  %s2057_s0 = inlined_call_operand.vmem [shape: f32[2,5,5], index: 0, kind: input, shape index: {}]   ;;  %s2058_s1 = inlined_call_operand.vmem [shape: f32[2,5,5], index: 1, kind: input, shape index: {}]   ;;  %s2059_s2 = inlined_call_operand.vmem [shape: f32[2,5,5], index: 2, kind: input, shape index: {}]   ;;  %s2060_s3 = inlined_call_operand.vmem [shape: f32[2,5,5], index: 3, kind: input, shape index: {}]   ;;  %s2061_s4 = inlined_call_operand.vmem [shape: f32[2,5], index: 4, kind: output, shape index: {0}]   ;;  %s2062_s5 = inlined_call_operand.vmem [shape: f32[2,5], index: 5, kind: output, shape index: {1}]   ;;  %s2063_s6 = inlined_call_operand.vmem [shape: f32[2,5,5], index: 6, kind: output, shape index: {2}]   ;;  %s2064_s7 = inlined_call_operand.vmem [shape: f32[2,5,5], index: 7, kind: output, shape index: {3}]   ;;  %s2065_s8 = inlined_call_operand.vmem [shape: f32[2,5,5], index: 8, kind: output, shape index: {4}]   ;;  %s2066_s9 = inlined_call_operand.vmem [shape: f32[2,5,5], index: 9, kind: output, shape index: {5}]  }
   0x1   :  { %s1728_s11 = smov 0  }
   0x2 LB: > { %s1740_s12 = sadd.s32 4294967295, %s1661_s11   ;;  %s1743_s13 = sadd.s32 1, %s1661_s11   ;;  %s1661_s11 = sphi %s1728_s11, %s2073_s11   ;;  %s1657_s10 = sphi %s1726_s10, %s2072_s10   ;;  %s1653_s30 = sphi %s1724_s30, %s2071_s30  }
   0x3   : > { %s20_s14 = sshrl.u32 %s1661_s11, 3  ;;  %s21_s15 = sshrl.u32 %s1743_s13, 3 }
   0x4   : > { %s22_s16 = ssub.s32 %s20_s14, %s21_s15  ;;  %s25_s17 = sadd.s32 1, %s1657_s10 }
   0x5   : > { %p23_p0 = scmp.eq.s32.totalorder %s22_s16, 0  ;;  %p35_p1 = scmp.ne.s32.totalorder %s1657_s10, %s1653_s30 }
   0x6   : > { %p36_p2 = scmp.eq.s32.totalorder %s1740_s12, 1  ;;  %p1522_p4 = scmp.ge.s32.totalorder %s1661_s11, 2 }
   0x7   : > { %s1752_s18 = scalar_select %p23_p0, %s1657_s10, %s25_s17  }
   0x8   : > { %p1754_p3 = por %p36_p2, %p35_p1  ;;  %86 = sbr.rel (%p1522_p4) target bundleno = 18 (0x12), region = 16 }
   0x9   : > { %2067 = sst [smem:[#allocation25_spill]] %s1752_s18  ;;  %s88_s20 = sand.u32 (!%p1522_p4), 1, %s1661_s11  }
   0xa   : > { %s1524_s21 = sshll.u32 (!%p1522_p4), %s1661_s11, 3  ;;  %s1523_s22 = sshll.u32 (!%p1522_p4), %s88_s20, 3 }
   0xb   : > { %s92_s25 = scalar_lea.vmem (!%p1522_p4), %s2057_s0, %s1524_s21  ;;  %s90_s26 = scalar_lea.vmem (!%p1522_p4), [#allocation0], %s1523_s22 }
   0xc   : > { %s131_s29 = scalar_lea.vmem (!%p1522_p4), %s2058_s1, %s1524_s21  ;;  %s170_s16 = scalar_lea.vmem (!%p1522_p4), %s2059_s2, %s1524_s21 }
   0xd   : > { %v121_v0 = vld [vmem:[%s92_s25] sm:$0xff]  ;;  %s129_s17 = scalar_lea.vmem [#allocation1], %s1523_s22  ;;  %s209_s23 = scalar_lea.vmem %s2060_s3, %s1524_s21 }
   0xe   : > { %122 = vst [vmem:[%s90_s26] sm:$0xff] %v121_v0  ;;  %v160_v1 = vld [vmem:[%s131_s29] sm:$0xff]  ;;  %s168_s24 = scalar_lea.vmem [#allocation2], %s1523_s22  ;;  %s207_s25 = scalar_lea.vmem [#allocation3], %s1523_s22 }
   0xf   : > { %161 = vst [vmem:[%s129_s17] sm:$0xff] %v160_v1  ;;  %v199_v2 = vld [vmem:[%s170_s16] sm:$0xff] }
  0x10   : > { %200 = vst [vmem:[%s168_s24] sm:$0xff] %v199_v2  ;;  %v238_v3 = vld [vmem:[%s209_s23] sm:$0xff] }
  0x11   : > { %239 = vst [vmem:[%s207_s25] sm:$0xff] %v238_v3 }
  0x12 PF: > { %p1531_p5 = scmp.ge.s32.totalorder %s1661_s11, 1  ;;  %p244_p6 = scmp.lt.s32.totalorder %s1661_s11, 3 }
  0x14   : > { %p245_p7 = pnand %p1531_p5, %p244_p6 }
  0x16   : > { %248 = sbr.rel (%p245_p7) target bundleno = 946 (0x3b2), region = 156 }
  0x1b   : > { %s251_s26 = sand.u32 1, %s1740_s12   ;;  %s285_s27 = sand.u32 1, %s1653_s30   ;;  %v329_v4 = vlaneseq  ;;  %v1671_v9 = vmov 0.0  }
  0x1c   : > { %s1777_s28 = sshll.u32 %s251_s26, 3  ;;  %s1779_s18 = sshll.u32 %s285_s27, 1 }
  0x1d   : > { %v1781_v5 = vand.u32 127, %v329_v4  ;;  %v1783_v6 = vshrl.u32 %v329_v4, 7  ;;  %s253_s11 = scalar_lea.vmem [#allocation0], %s1777_s28  ;;  %s257_s21 = scalar_lea.vmem [#allocation1], %s1777_s28 }
  0x1e   : > { %v313_v7 = vld [vmem:[%s253_s11] sm:$0xff]  ;;  %v316_v8 = vld [vmem:[%s257_s21] sm:$0xff]  ;;  %s1788_s30 = scalar_lea.vmem [#allocation8], %s1777_s28  ;;  %s312_s22 = smov [#allocation12] }
  0x1f   : > { %324 = vst [vmem:[%s1788_s30] sm:$0xff] %v1671_v9  ;;  %s315_s29 = smov [#allocation13]  ;;  %s261_s14 = scalar_lea.vmem [#allocation2], %s1777_s28  ;;  %v331_v5 = vmov %v1781_v5  ;;  %v334_v6 = vmov %v1783_v6  ;;  %vm1411_vm2 = vcmp.lt.s32.totalorder %v1781_v5, 5 }
  0x20   : > { %v319_v10 = vld [vmem:[%s261_s14] sm:$0xff]  ;;  %s1793_s15 = scalar_lea.vmem [#allocation9], %s1777_s28  ;;  %314 = vst [vmem:[%s312_s22] sm:$0xff] %v313_v7  ;;  %s318_s16 = smov [#allocation14]  ;;  %vm338_vm0 = vcmp.eq.s32.totalorder %v334_v6, %v331_v5  ;;  %v344_v5 = vmov %v1781_v5  ;;  %v347_v6 = vmov %v1783_v6 }
  0x21   : > { %325 = vst [vmem:[%s1793_s15] sm:$0xff] %v1671_v9  ;;  %s321_s17 = smov [#allocation15]  ;;  %s265_s20 = scalar_lea.vmem [#allocation3], %s1777_s28  ;;  %vm351_vm1 = vcmp.eq.s32.totalorder %v347_v6, %v344_v5  ;;  %v1403_v5 = vmov %v1781_v5  ;;  %v1406_v6 = vmov %v1783_v6 }
  0x22   : > { %v322_v11 = vld [vmem:[%s265_s20] sm:$0xff]  ;;  %317 = vst [vmem:[%s315_s29] sm:$0xff] %v316_v8  ;;  %s328_s30 = smov %s1788_s30  ;;  %s1801_s23 = scalar_lea.vmem [#allocation10], %s1777_s28  ;;  %v1420_v5 = vmov %v1781_v5  ;;  %v1423_v6 = vmov %v1783_v6  ;;  %vm1416_vm3 = vcmp.eq.s32.totalorder %v1406_v6, %v1403_v5 }
  0x23   : > { %320 = vst [vmem:[%s318_s16] sm:$0xff] %v319_v10  ;;  %s1805_s24 = scalar_lea.vmem [#allocation11], %s1777_s28  ;;  %s287_s25 = scalar_lea.vmem [#allocation5], %s1779_s18  ;;  %v1437_v5 = vmov %v1781_v5  ;;  %v1440_v6 = vmov %v1783_v6 }
  0x24   : > { %323 = vst [vmem:[%s321_s17] sm:$0xff] %v322_v11  ;;  %s293_s26 = scalar_lea.vmem [#allocation7], %s1779_s18  ;;  %s1407_s27 = smov [#allocation12]  ;;  %v1454_v5 = vmov %v1781_v5  ;;  %v1457_v6 = vmov %v1783_v6 }
  0x25   : > { %326 = vst [vmem:[%s1801_s23] sm:$0xff] %v1671_v9  ;;  %s1424_s28 = smov [#allocation13]  ;;  %s1441_s11 = smov [#allocation14]  ;;  %vm1467_vm4 = vcmp.eq.s32.totalorder %v1457_v6, %v1454_v5 }
  0x26   : > { %327 = vst [vmem:[%s1805_s24] sm:$0xff] %v1671_v9  ;;  %v335_v12 = vld [vmem:[%s328_s30] sm:$0x1f]  ;;  %s341_s24 = smov %s1805_s24  ;;  %s1458_s21 = smov [#allocation15] }
  0x27   : > { %v339_v13 = vsel %vm338_vm0, 1.0, %v335_v12  ;;  %v1413_v16 = vld [vmem:[%s1407_s27] sm:$0x1f] }
  0x28   : > { %340 = vst [vmem:[%s328_s30] sm:$0x1f] %v339_v13  ;;  %v1414_v18 = vsel %vm1411_vm2, %v1413_v16, 0.0 }
  0x29   : > { %v1430_v17 = vld [vmem:[%s1424_s28] sm:$0x1f]  ;;  %v1415_v22 = vmul.f32 %v1414_v18, %v1414_v18 }
  0x2a   : > { %v1431_v19 = vsel %vm1411_vm2, %v1430_v17, 0.0  ;;  %v1447_v20 = vld [vmem:[%s1441_s11] sm:$0x1f] }
  0x2b   : > { %v1464_v21 = vld [vmem:[%s1458_s21] sm:$0x1f]  ;;  %v1432_v23 = vmul.f32 %v1431_v19, %v1431_v19  ;;  %v1448_v24 = vsel %vm1411_vm2, %v1447_v20, 0.0  ;;  %v1417_v29 = vsel %vm1416_vm3, 0.0, %v1415_v22 }
  0x2c   : > { %v1465_v25 = vsel %vm1411_vm2, %v1464_v21, 0.0  ;;  %v1449_v26 = vmul.f32 %v1448_v24, %v1448_v24 }
  0x2d   : > { %v348_v14 = vld [vmem:[%s341_s24] sm:$0x1f]  ;;  %v1434_v27 = vadd.f32 %v1432_v23, %v1415_v22  ;;  %v1466_v28 = vmul.f32 %v1465_v25, %v1465_v25  ;;  %v1433_v31 = vadd.f32 %v1432_v23, %v1417_v29 }
  0x2e   : > { %v352_v15 = vsel %vm351_vm1, 1.0, %v348_v14 }
  0x2f   : > { %353 = vst [vmem:[%s341_s24] sm:$0x1f] %v352_v15  ;;  %v1451_v30 = vadd.f32 %v1449_v26, %v1434_v27  ;;  %v1450_v33 = vadd.f32 %v1449_v26, %v1433_v31  ;;  %v1468_v34 = vsel %vm1467_vm4, 0.0, %v1466_v28 }
  0x31   : > { %v1470_v32 = vadd.f32 %v1466_v28, %v1451_v30  ;;  %v1469_v35 = vadd.f32 %v1468_v34, %v1450_v33 }
  0x33   : > { %1471 = vadd.xlane.f32.xlu0 %v1470_v32 }
  0x3b   : > { %1479 = vadd.xlane.f32.xlu0 %v1469_v35 }
  0xa6   : > { %v1472_v36 = vpop.xlane.xlu0 %1471 }
  0xa7   : > { %v1473_v37 = vrot.slane %v1472_v36, 4 }
  0xa9   : > { %v1474_v38 = vadd.f32 %v1473_v37, %v1472_v36 }
  0xab   : > { %v1475_v39 = vrot.slane %v1474_v38, 2 }
  0xad   : > { %v1476_v43 = vadd.f32 %v1475_v39, %v1474_v38 }
  0xae   : > { %v1480_v40 = vpop.xlane.xlu0 %1479 }
  0xaf   : > { %v1481_v41 = vrot.slane %v1480_v40, 4  ;;  %v1477_v46 = vrot.slane %v1476_v43, 1 }
  0xb1   : > { %v1482_v42 = vadd.f32 %v1481_v41, %v1480_v40  ;;  %v1478_v49 = vadd.f32 %v1477_v46, %v1476_v43 }
  0xb3   : > { %v1483_v44 = vrot.slane %v1482_v42, 2 }
  0xb5   : > { %v1484_v45 = vadd.f32 %v1483_v44, %v1482_v42 }
  0xb7   : > { %v1485_v47 = vrot.slane %v1484_v45, 1 }
  0xb9   : > { %v1486_v48 = vadd.f32 %v1485_v47, %v1484_v45 }
  0xbb   : > { %1572 = vpush %v1486_v48 }
  0xbc   : > { %1574 = vpush %v1478_v49 }
  0xec   : > { %s1573_s22 = spop %1572 }
  0xed   : > { %s1575_s29 = spop %1574 }
  0xee   : > { %s1489_s14 = smul.f32 1e-10, %s1575_s29 }
  0xf0   : > { %p1490_p8 = scmp.le.f32.partialorder %s1573_s22, %s1489_s14 }
  0xf1   : > { %s1830_s16 = smov (!%p1490_p8), 0  }
  0xf2   : > { %1493 = sbr.rel (%p1490_p8) target bundleno = 900 (0x384), region = 499 }
  0xf7 LB: >> { %s1835_s17 = smov 0   ;;  %s1665_s16 = sphi %s1830_s16, %s2069_s16  }
  0xf8 LB: >>> { %s458_s20 = smov [#allocation12]  ;;  %v462_v5 = vmov %v1781_v5  ;;  %v465_v6 = vmov %v1783_v6  ;;  %s478_s27 = smov [#allocation13]  ;;  %s1669_s17 = sphi %s1835_s17, %s457_s17  }
  0xf9   : >>> { %v482_v5 = vmov %v1781_v5  ;;  %v485_v6 = vmov %v1783_v6  ;;  %v466_v50 = vld [vmem:[%s458_s20] sm:$0x1f]  ;;  %vm469_vm5 = vcmp.eq.s32.totalorder %v465_v6, %v462_v5  ;;  %s498_s28 = smov [#allocation15]  ;;  %s459_s11 = smov [#allocation16] }
  0xfa   : >>> { %vm489_vm6 = vcmp.eq.s32.totalorder %v485_v6, %v482_v5  ;;  %v502_v5 = vmov %v1781_v5  ;;  %v505_v6 = vmov %v1783_v6  ;;  %v470_v51 = vsel %vm469_vm5, %v466_v50, 0.0  ;;  %v486_v52 = vld [vmem:[%s478_s27] sm:$0x1f]  ;;  %s479_s21 = smov [#allocation17]  ;;  %s499_s22 = smov [#allocation18] }
  0xfb   : >>> { %vm509_vm7 = vcmp.eq.s32.totalorder %v505_v6, %v502_v5  ;;  %v471_v53 = vrot.slane %v470_v51, 4  ;;  %v490_v54 = vsel %vm489_vm6, %v486_v52, 0.0  ;;  %v506_v55 = vld [vmem:[%s498_s28] sm:$0x1f]  ;;  %s522_s29 = smov [#allocation17]  ;;  %s520_s14 = smov [#allocation16]  ;;  %v611_v5 = vmov %v1781_v5 }
  0xfc   : >>> { %v491_v56 = vrot.slane %v490_v54, 4  ;;  %v510_v57 = vsel %vm509_vm7, %v506_v55, 0.0  ;;  %s524_s20 = smov [#allocation18]  ;;  %s599_s27 = smov [#allocation19]  ;;  %v614_v6 = vmov %v1783_v6 }
  0xfd   : >>> { %v472_v58 = vadd.f32 %v471_v53, %v470_v51  ;;  %v511_v59 = vrot.slane %v510_v57, 4  ;;  %s601_s28 = smov [#allocation20]  ;;  %s1862_s30 = smov %s1788_s30 }
  0xfe   : >>> { %v492_v60 = vadd.f32 %v491_v56, %v490_v54  ;;  %s1865_s15 = smov %s1793_s15  ;;  %s1871_s23 = smov %s1801_s23 }
  0xff   : >>> { %v473_v61 = vrot.slane %v472_v58, 2  ;;  %v512_v62 = vadd.f32 %v511_v59, %v510_v57  ;;  %s1875_s24 = smov %s1805_s24  ;;  %s457_s17 = sadd.s32 1, %s1669_s17  }
 0x100   : >>> { %v493_v63 = vrot.slane %v492_v60, 2  ;;  %p454_p9 = scmp.ge.s32.totalorder %s457_s17, 9  }
 0x101   : >>> { %v474_v0 = vadd.f32 %v473_v61, %v472_v58  ;;  %v513_v1 = vrot.slane %v512_v62, 2 }
 0x102   : >>> { %v494_v2 = vadd.f32 %v493_v63, %v492_v60 }
 0x103   : >>> { %v475_v3 = vrot.slane %v474_v0, 1  ;;  %v514_v4 = vadd.f32 %v513_v1, %v512_v62 }
 0x104   : >>> { %v495_v7 = vrot.slane %v494_v2, 1 }
 0x105   : >>> { %v476_v8 = vadd.f32 %v475_v3, %v474_v0  ;;  %v515_v9 = vrot.slane %v514_v4, 1 }
 0x106   : >>> { %v496_v10 = vadd.f32 %v495_v7, %v494_v2 }
 0x107   : >>> { %477 = vst [vmem:[%s459_s11] sm:$0x1] %v476_v8  ;;  %v516_v11 = vadd.f32 %v515_v9, %v514_v4  ;;  %s518_s11 = smov [#allocation21] }
 0x108   : >>> { %497 = vst [vmem:[%s479_s21] sm:$0x1] %v496_v10  ;;  %s519_s21 = smov [#allocation22]  ;;  %s603_s11 = smov %s518_s11 }
 0x109   : >>> { %517 = vst [vmem:[%s499_s22] sm:$0x1] %v516_v11  ;;  %s605_s21 = smov %s519_s21  ;;  %s607_s22 = smov [#allocation21] }
 0x10e   : >>> { %v521_v19 = vld [vmem:[%s520_s14] sm:$0xff]  ;;  %s620_s14 = smov [#allocation23] }
 0x10f   : >>> { %v1846_v12 = vld [vmem:[%s522_s29] sm:$0xff]  ;;  %v575_v43 = vand.u32 2147483647, %v521_v19  ;;  %s622_s29 = smov [#allocation22] }
 0x110   : >>> { %v527_v13 = vmul.f32 2.0, %v1846_v12  ;;  %v525_v20 = vld [vmem:[%s524_s20] sm:$0xff]  ;;  %v576_v51 = vand.u32 2147483647, %v1846_v12  ;;  %s635_s20 = smov [#allocation24] }
 0x111   : >>> { %v526_v23 = vsub.f32 %v525_v20, %v521_v19  ;;  %v577_v44 = vand.u32 2147483647, %v525_v20 }
 0x112   : >>> { %1623 = vrcp.f32 %v527_v13  ;;  %v539_v16 = vand.u32 2147483648, %v527_v13  ;;  %vm533_vm8 = vweird.f32 %v527_v13  ;;  %v537_v18 = vand.u32 2147483647, %v527_v13 }
 0x113   : >>> { %v578_v46 = vmin.f32 %v575_v43, %v577_v44 }
 0x114   : >>> { %v540_v22 = vor.u32 1.1754944e-38, %v539_v16  ;;  %vm538_vm11 = vcmp.eq.f32.partialorder %v537_v18, 8.507059e+37 }
 0x115   : >>> { %v579_v52 = vmul.f32 1.1920929e-08, %v578_v46 }
 0x117   : >>> { %vm580_vm4 = vcmp.le.f32.partialorder %v576_v51, %v579_v52 }
 0x118   : >>> { %v1624_v14 = vpop.eup %1623 }
 0x119   : >>> { %v529_v15 = vmul.f32 %v1624_v14, %v527_v13  ;;  %vm534_vm9 = vweird.f32 %v1624_v14 }
 0x11a   : >>> { %vm535_vm10 = vmor %vm533_vm8, %vm534_vm9  ;;  %vm616_vm8 = vcmp.eq.s32.totalorder %v614_v6, %v611_v5  ;;  %v626_v5 = vmov %v1781_v5  ;;  %v629_v6 = vmov %v1783_v6 }
 0x11b   : >>> { %v530_v17 = vsub.f32 1.0, %v529_v15  ;;  %vm631_vm9 = vcmp.eq.s32.totalorder %v629_v6, %v626_v5  ;;  %v697_v5 = vmov %v1781_v5 }
 0x11c   : >>> { %v738_v5 = vmov %v1781_v5 }
 0x11d   : >>> { %v531_v21 = vmul.f32 %v1624_v14, %v530_v17  ;;  %v724_v5 = vmov %v1781_v5 }
 0x11f   : >>> { %v532_v24 = vadd.f32 %v1624_v14, %v531_v21 }
 0x121   : >>> { %v536_v25 = vsel %vm535_vm10, %v1624_v14, %v532_v24  ;;  %v871_v24 = vld [vmem:[%s1871_s23] sm:$0x1f]  ;;  %vm821_vm10 = vcmp.eq.s32.totalorder %v1783_v6, 0 }
 0x122   : >>> { %v541_v26 = vsel %vm538_vm11, %v540_v22, %v536_v25  ;;  %vm833_vm11 = vcmp.eq.s32.totalorder %v1783_v6, 4  ;;  %v700_v6 = vmov %v1783_v6 }
 0x123   : >>> { %v542_v27 = vmul.f32 %v541_v26, %v526_v23  ;;  %v741_v6 = vmov %v1783_v6 }
 0x124   : >>> { %v727_v6 = vmov %v1783_v6 }
 0x125   : >>> { %v544_v28 = vmul.f32 %v542_v27, %v542_v27  ;;  %vm543_vm14 = vcmp.ge.f32.partialorder %v542_v27, 0.0 }
 0x127   : >>> { %v545_v29 = vadd.f32 1.0, %v544_v28 }
 0x129   : >>> { %1625 = vrsqrt.f32 %v545_v29  ;;  %vm553_vm12 = vcmp.eq.f32.partialorder %v545_v29, inf  ;;  %v556_v36 = vand.u32 2147483648, %v545_v29  ;;  %vm555_vm13 = vcmp.eq.f32.partialorder %v545_v29, 0.0 }
 0x12f   : >>> { %v1626_v30 = vpop.eup %1625 }
 0x130   : >>> { %v547_v31 = vmul.f32 %v1626_v30, %v545_v29 }
 0x132   : >>> { %v548_v32 = vmul.f32 %v1626_v30, %v547_v31 }
 0x134   : >>> { %v549_v33 = vmul.f32 0.5, %v548_v32 }
 0x136   : >>> { %v550_v34 = vsub.f32 1.5, %v549_v33 }
 0x138   : >>> { %v551_v35 = vmul.f32 %v1626_v30, %v550_v34 }
 0x13a   : >>> { %v552_v37 = vmul.f32 %v551_v35, %v545_v29 }
 0x13c   : >>> { %v554_v38 = vsel %vm553_vm12, %v545_v29, %v552_v37  ;;  %v872_v29 = vld [vmem:[%s1875_s24] sm:$0x1f]  ;;  %vm705_vm12 = vcmp.eq.s32.totalorder %v700_v6, %v697_v5  ;;  %v711_v5 = vmov %v1781_v5  ;;  %v714_v6 = vmov %v1783_v6 }
 0x13d   : >>> { %v557_v39 = vsel %vm555_vm13, %v556_v36, %v554_v38  ;;  %vm746_vm13 = vcmp.eq.s32.totalorder %v741_v6, %v738_v5 }
 0x13e   : >>> { %v558_v40 = vxor.u32 2147483648, %v557_v39 }
 0x140   : >>> { %v559_v41 = vsel %vm543_vm14, %v557_v39, %v558_v40  ;;  %vm731_vm14 = vcmp.eq.s32.totalorder %v727_v6, %v724_v5 }
 0x141   : >>> { %v560_v42 = vadd.f32 %v559_v41, %v542_v27 }
 0x143   : >>> { %1627 = vrcp.f32 %v560_v42  ;;  %v572_v48 = vand.u32 2147483648, %v560_v42  ;;  %vm566_vm15 = vweird.f32 %v560_v42  ;;  %v570_v50 = vand.u32 2147483647, %v560_v42 }
 0x145   : >>> { %v573_v54 = vor.u32 1.1754944e-38, %v572_v48  ;;  %vm571_vm3 = vcmp.eq.f32.partialorder %v570_v50, 8.507059e+37 }
 0x149   : >>> { %v1628_v45 = vpop.eup %1627 }
 0x14a   : >>> { %v562_v47 = vmul.f32 %v1628_v45, %v560_v42  ;;  %vm567_vm0 = vweird.f32 %v1628_v45 }
 0x14b   : >>> { %vm568_vm1 = vmor %vm566_vm15, %vm567_vm0  ;;  %vm718_vm15 = vcmp.eq.s32.totalorder %v714_v6, %v711_v5  ;;  %vm777_vm0 = vcmp.eq.s32.totalorder %v1781_v5, 4  ;;  %v361_v6 = vmov (%p454_p9), %v1783_v6 }
 0x14c   : >>> { %v563_v49 = vsub.f32 1.0, %v562_v47 }
 0x14e   : >>> { %v564_v53 = vmul.f32 %v1628_v45, %v563_v49 }
 0x150   : >>> { %v565_v55 = vadd.f32 %v1628_v45, %v564_v53 }
 0x152   : >>> { %v569_v56 = vsel %vm568_vm1, %v1628_v45, %v565_v55  ;;  %vm760_vm1 = vcmp.eq.s32.totalorder %v1781_v5, 0 }
 0x153   : >>> { %v574_v57 = vsel %vm571_vm3, %v573_v54, %v569_v56  ;;  %vm764_vm3 = vcmp.eq.s32.totalorder %v1781_v5, 1  ;;  %v358_v5 = vmov (%p454_p9), %v1781_v5 }
 0x154   : >>> { %v581_v58 = vsel %vm580_vm4, 0.0, %v574_v57  ;;  %vm373_vm4 = vcmp.eq.s32.totalorder (%p454_p9), %v361_v6, %v358_v5  ;;  %v377_v5 = vmov (%p454_p9), %v1781_v5  ;;  %v380_v6 = vmov (%p454_p9), %v1783_v6 }
 0x155   : >>> { %v582_v59 = vmul.f32 %v581_v58, %v581_v58  ;;  %v595_v60 = vmul.f32 %v581_v58, %v1846_v12  ;;  %v394_v5 = vmov (%p454_p9), %v1781_v5  ;;  %v397_v6 = vmov (%p454_p9), %v1783_v6 }
 0x156   : >> { %v411_v5 = vmov (%p454_p9), %v1781_v5  ;;  %v414_v6 = vmov (%p454_p9), %v1783_v6 }
 0x157   : >>> { %v583_v61 = vadd.f32 1.0, %v582_v59  ;;  %v596_v62 = vsub.f32 %v521_v19, %v595_v60  ;;  %v598_v63 = vadd.f32 %v595_v60, %v525_v20  ;;  %v869_v19 = vld [vmem:[%s1862_s30] sm:$0x1f] }
 0x158   : >>> { %v870_v20 = vld [vmem:[%s1865_s15] sm:$0x1f] }
 0x159   : >>> { %1629 = vrsqrt.f32 %v583_v61  ;;  %600 = vst [vmem:[%s599_s27] sm:$0xff] %v596_v62  ;;  %vm590_vm5 = vweird.f32 %v583_v61  ;;  %s637_s27 = smov [#allocation23] }
 0x15a   : >>> { %602 = vst [vmem:[%s601_s28] sm:$0xff] %v598_v63  ;;  %s1855_s28 = smov [#allocation12] }
 0x15b   : >>> { %v645_v22 = vld [vmem:[%s1855_s28] sm:$0x1f] }
 0x15f   : >>> { %v1630_v0 = vpop.eup %1629 }
 0x160   : >>> { %v585_v1 = vmul.f32 %v1630_v0, %v583_v61  ;;  %vm591_vm6 = vweird.f32 %v1630_v0 }
 0x161   : >>> { %vm592_vm7 = vmor %vm590_vm5, %vm591_vm6  ;;  %vm426_vm5 = vcmp.eq.s32.totalorder (%p454_p9), %v414_v6, %v411_v5 }
 0x162   : >>> { %v586_v2 = vmul.f32 %v1630_v0, %v585_v1 }
 0x164   : >>> { %v587_v3 = vmul.f32 0.5, %v586_v2 }
 0x166   : >>> { %v588_v4 = vsub.f32 1.5, %v587_v3 }
 0x168   : >>> { %v589_v7 = vmul.f32 %v1630_v0, %v588_v4 }
 0x16a   : >>> { %v593_v8 = vsel %vm592_vm7, %v1630_v0, %v589_v7 }
 0x16b   : >>> { %604 = vst [vmem:[%s603_s11] sm:$0xff] %v593_v8  ;;  %v594_v9 = vmul.f32 %v593_v8, %v581_v58  ;;  %s1857_s11 = smov [#allocation13] }
 0x16c   : >>> { %v646_v16 = vld [vmem:[%s1857_s11] sm:$0x1f] }
 0x16d   : >>> { %606 = vst [vmem:[%s605_s21] sm:$0xff] %v594_v9  ;;  %s1859_s21 = smov [#allocation14] }
 0x16e   : >>> { %v647_v17 = vld [vmem:[%s1859_s21] sm:$0x1f] }
 0x172   : >>> { %v608_v10 = vld [vmem:[%s607_s22] ss:$0 sm:$0xff]  ;;  %s861_s22 = smov [#allocation23] }
 0x173   : >>> { %v617_v11 = vsel %vm616_vm8, %v608_v10, 0.0 }
 0x174   : >>> { %618 = vadd.xlane.f32.xlu0 %v617_v11  ;;  %v623_v12 = vld [vmem:[%s622_s29] ss:$0 sm:$0xff]  ;;  %s1867_s29 = smov [#allocation15] }
 0x175   : >>> { %v632_v13 = vsel %vm631_vm9, %v623_v12, 0.0  ;;  %v648_v23 = vld [vmem:[%s1867_s29] sm:$0x1f] }
 0x17c   : >>> { %633 = vadd.xlane.f32.xlu0 %v632_v13 }
 0x1e7   : >>> { %v619_v14 = vpop.xlane.xlu0 %618 }
 0x1e8   : >>> { %621 = vst [vmem:[%s620_s14] sm:$0xff] %v619_v14  ;;  %s639_s14 = smov [#allocation24] }
 0x1ef   : >>> { %v634_v15 = vpop.xlane.xlu0 %633  ;;  %v638_v18 = vld [vmem:[%s637_s27] sm:$0xff]  ;;  %s665_s27 = smov [#allocation21] }
 0x1f0   : >>> { %636 = vst [vmem:[%s635_s20] sm:$0xff] %v634_v15  ;;  %s863_s20 = smov [#allocation24]  ;;  %v862_v21 = vld [vmem:[%s861_s22] sm:$0xff]  ;;  %v652_v25 = vmul.f32 %v646_v16, %v638_v18  ;;  %v656_v26 = vmul.f32 %v647_v17, %v638_v18  ;;  %v649_v46 = vmul.f32 %v645_v22, %v638_v18  ;;  %v659_v48 = vmul.f32 %v648_v23, %v638_v18  ;;  %s667_s22 = smov [#allocation22] }
 0x1f1   : >>> { %v873_v30 = vmul.f32 %v869_v19, %v862_v21  ;;  %v876_v31 = vmul.f32 %v870_v20, %v862_v21  ;;  %v880_v38 = vmul.f32 %v871_v24, %v862_v21  ;;  %v883_v42 = vmul.f32 %v872_v29, %v862_v21  ;;  %v666_v52 = vld [vmem:[%s665_s27] ss:$0 sm:$0xff]  ;;  %s693_s27 = smov [#allocation12] }
 0x1f2   : >>> { %v668_v53 = vld [vmem:[%s667_s22] ss:$0 sm:$0xff]  ;;  %s734_s22 = smov [#allocation15] }
 0x1f7   : >>> { %v640_v27 = vld [vmem:[%s639_s14] sm:$0xff]  ;;  %s1889_s14 = smov [#allocation14] }
 0x1f8   : >>> { %v864_v28 = vld [vmem:[%s863_s20] sm:$0xff]  ;;  %v653_v32 = vmul.f32 %v648_v23, %v640_v27  ;;  %v655_v33 = vmul.f32 %v645_v22, %v640_v27  ;;  %v650_v39 = vmul.f32 %v647_v17, %v640_v27  ;;  %v658_v43 = vmul.f32 %v646_v16, %v640_v27  ;;  %s735_s20 = smov [#allocation20] }
 0x1f9   : >>> { %v874_v34 = vmul.f32 %v871_v24, %v864_v28  ;;  %v877_v35 = vmul.f32 %v872_v29, %v864_v28  ;;  %v879_v36 = vmul.f32 %v869_v19, %v864_v28  ;;  %v882_v37 = vmul.f32 %v870_v20, %v864_v28  ;;  %v742_v23 = vld [vmem:[%s735_s20] ss:$0 sm:$0xff]  ;;  %s1672_s20 = smov 1  }
 0x1fa   : >>> { %v654_v40 = vsub.f32 %v652_v25, %v653_v32  ;;  %v657_v41 = vadd.f32 %v656_v26, %v655_v33  ;;  %v651_v50 = vsub.f32 %v649_v46, %v650_v39  ;;  %v660_v51 = vadd.f32 %v659_v48, %v658_v43 }
 0x1fb   : >>> { %v875_v44 = vsub.f32 %v873_v30, %v874_v34  ;;  %v878_v45 = vsub.f32 %v876_v31, %v877_v35  ;;  %v881_v47 = vadd.f32 %v880_v38, %v879_v36  ;;  %v884_v49 = vadd.f32 %v883_v42, %v882_v37 }
 0x1fc   : >>> { %662 = vst [vmem:[%s1857_s11] sm:$0x1f] %v654_v40  ;;  %s1891_s11 = smov [#allocation13] }
 0x1fd   : >>> { %663 = vst [vmem:[%s1859_s21] sm:$0x1f] %v657_v41  ;;  %s1901_s21 = smov [#allocation12] }
 0x1fe   : >>> { %885 = vst [vmem:[%s1862_s30] sm:$0x1f] %v875_v44  ;;  %s889_s30 = smov %s1788_s30 }
 0x1ff   : >>> { %886 = vst [vmem:[%s1865_s15] sm:$0x1f] %v878_v45  ;;  %s1898_s15 = smov %s1793_s15 }
 0x200   : >>> { %887 = vst [vmem:[%s1871_s23] sm:$0x1f] %v881_v47  ;;  %s890_s23 = smov %s1801_s23 }
 0x201   : >>> { %888 = vst [vmem:[%s1875_s24] sm:$0x1f] %v884_v49  ;;  %s1907_s24 = smov %s1805_s24 }
 0x202   : >>> { %661 = vst [vmem:[%s1855_s28] sm:$0x1f] %v651_v50  ;;  %s672_s28 = smov [#allocation15] }
 0x203   : >>> { %664 = vst [vmem:[%s1867_s29] sm:$0x1f] %v660_v51  ;;  %v674_v55 = vld [vmem:[%s1891_s11] sm:$0x1f]  ;;  %s694_s29 = smov [#allocation19] }
 0x204   : >>> { %v675_v54 = vld [vmem:[%s1889_s14] sm:$0x1f]  ;;  %v678_v4 = vmul.f32 %v674_v55, %v668_v53  ;;  %v681_v12 = vmul.f32 %v674_v55, %v666_v52 }
 0x205   : >>> { %v891_v56 = vld [vmem:[%s889_s30] ss:$0 sm:$0xff]  ;;  %v1551_v58 = vld [vmem:[%s889_s30 + $0x4] ss:$0 sm:$0xff]  ;;  %v686_v9 = vmul.f32 %v675_v54, %v668_v53  ;;  %v683_v10 = vmul.f32 %v675_v54, %v666_v52 }
 0x206   : >>> { %v1550_v57 = vld [vmem:[%s889_s30 - $0x1] sm:$0x1e]  ;;  %v1555_v62 = vld [vmem:[%s1898_s15 + $0x4] ss:$0 sm:$0xff] }
 0x207   : >>> { %v898_v59 = vsel %vm821_vm10, %v891_v56, %v1550_v57  ;;  %v915_v60 = vld [vmem:[%s1898_s15] ss:$0 sm:$0xff]  ;;  %v1553_v0 = vld [vmem:[%s890_s23 + $0x1] sm:$0xf] }
 0x208   : >>> { %v1554_v61 = vld [vmem:[%s1898_s15 - $0x1] sm:$0x1e]  ;;  %901 = vst [vmem:[%s889_s30] sm:$0x1f] %v898_v59  ;;  %v910_v2 = vsel %vm833_vm11, %v1551_v58, %v1553_v0 }
 0x209   : >>> { %v902_v63 = vld [vmem:[%s890_s23] ss:$0 sm:$0xff]  ;;  %v922_v1 = vsel %vm821_vm10, %v915_v60, %v1554_v61  ;;  %v1557_v3 = vld [vmem:[%s1907_s24 + $0x1] sm:$0xf] }
 0x20a   : >>> { %1552 = vst [vmem:[%s889_s30 + $0x1] sm:$0x1] %v902_v63  ;;  %v926_v7 = vld [vmem:[%s1907_s24] ss:$0 sm:$0xff]  ;;  %v934_v8 = vsel %vm833_vm11, %v1555_v62, %v1557_v3 }
 0x20b   : >>> { %912 = vst [vmem:[%s890_s23] sm:$0x1f] %v910_v2  ;;  %v673_v11 = vld [vmem:[%s1901_s21] sm:$0x1f] }
 0x20c   : >>> { %925 = vst [vmem:[%s1898_s15] sm:$0x1f] %v922_v1  ;;  %v676_v13 = vld [vmem:[%s672_s28] sm:$0x1f]  ;;  %v677_v14 = vmul.f32 %v673_v11, %v666_v52  ;;  %v680_v15 = vmul.f32 %v673_v11, %v668_v53 }
 0x20d   : >>> { %1556 = vst [vmem:[%s1898_s15 + $0x1] sm:$0x1] %v926_v7  ;;  %v687_v16 = vmul.f32 %v676_v13, %v666_v52  ;;  %v684_v17 = vmul.f32 %v676_v13, %v668_v53  ;;  %v701_v22 = vld [vmem:[%s694_s29] ss:$0 sm:$0xff]  ;;  %s1941_s29 = smov [#allocation14] }
 0x20e   : >>> { %936 = vst [vmem:[%s1907_s24] sm:$0x1f] %v934_v8  ;;  %v679_v18 = vsub.f32 %v677_v14, %v678_v4  ;;  %v682_v21 = vadd.f32 %v681_v12, %v680_v15 }
 0x20f   : >>> { %v688_v19 = vadd.f32 %v687_v16, %v686_v9  ;;  %v685_v20 = vsub.f32 %v683_v10, %v684_v17 }
 0x210   : >>> { %689 = vst [vmem:[%s1901_s21] sm:$0x1f] %v679_v18  ;;  %s708_s21 = smov [#allocation13] }
 0x211   : >>> { %692 = vst [vmem:[%s672_s28] sm:$0x1f] %v688_v19  ;;  %s1939_s28 = smov [#allocation15] }
 0x212   : >>> { %691 = vst [vmem:[%s1889_s14] sm:$0x1f] %v685_v20  ;;  %s721_s14 = smov [#allocation14] }
 0x213   : >>> { %690 = vst [vmem:[%s1891_s11] sm:$0x1f] %v682_v21  ;;  %s1937_s11 = smov [#allocation12] }
 0x217   : >>> { %v702_v24 = vld [vmem:[%s693_s27] sm:$0x1f] }
 0x218   : >>> { %v743_v25 = vld [vmem:[%s734_s22] sm:$0x1f]  ;;  %v706_v26 = vsel %vm705_vm12, %v701_v22, %v702_v24 }
 0x219   : >>> { %v747_v27 = vsel %vm746_vm13, %v742_v23, %v743_v25  ;;  %v728_v28 = vld [vmem:[%s721_s14] sm:$0x1f]  ;;  %707 = vst [vmem:[%s693_s27] sm:$0x1f] %v706_v26  ;;  %s750_s27 = smov [#allocation13] }
 0x21a   : >>> { %748 = vst [vmem:[%s734_s22] sm:$0x1f] %v747_v27  ;;  %v732_v29 = vsel %vm731_vm14, 0.0, %v728_v28  ;;  %v715_v30 = vld [vmem:[%s708_s21] sm:$0x1f]  ;;  %s1673_s22 = smov 127  }
 0x21b   : >>> { %733 = vst [vmem:[%s721_s14] sm:$0x1f] %v732_v29  ;;  %v719_v31 = vsel %vm718_vm15, 0.0, %v715_v30  ;;  %s1951_s14 = smov [#allocation13] }
 0x21c   : >>> { %720 = vst [vmem:[%s708_s21] sm:$0x1f] %v719_v31  ;;  %s814_s21 = smov [#allocation14] }
 0x220   : >>> { %v755_v32 = vld [vmem:[%s1937_s11] sm:$0x1f] }
 0x221   : >>> { %v783_v33 = vld [vmem:[%s1939_s28] sm:$0x1f]  ;;  %756 = vrot.lane.b32.xlu1 %v755_v32, %s1672_s20 }
 0x222   : >>> { %784 = vrot.lane.b32.xlu0 %v783_v33, %s1672_s20  ;;  %v787_v34 = vld [vmem:[%s1941_s29] sm:$0x1f] }
 0x223   : >>> { %788 = vrot.lane.b32.xlu2 %v787_v34, %s1672_s20  ;;  %v751_v35 = vld [vmem:[%s750_s27] sm:$0x1f] }
 0x224   : >>> { %v772_v36 = vld [vmem:[%s750_s27] sm:$0x1f] }
 0x225   : >>> { %v804_v37 = vld [vmem:[%s1939_s28] sm:$0x1f] }
 0x226   : >>> { %v754_v40 = vld [vmem:[%s1937_s11] sm:$0x1f] }
 0x227   : >>> { %v786_v51 = vld [vmem:[%s1941_s29] sm:$0x1f] }
 0x229   : >>> { %752 = vrot.lane.b32.xlu1 %v751_v35, %s1672_s20  ;;  %s813_s20 = smov [#allocation12] }
 0x22b   : >>> { %773 = vrot.lane.b32.xlu2 %v772_v36, %s1673_s22 }
 0x231   : >>> { %805 = vrot.lane.b32.xlu1 %v804_v37, %s1673_s22  ;;  %s398_s22 = smov (%p454_p9), [#allocation14] }
 0x27d   : >>> { %v789_v38 = vpop.permute.xlu2 %788 }
 0x27e   : >>> { %v793_v47 = vsel %vm760_vm1, %v787_v34, %v789_v38 }
 0x285   : >>> { %v774_v39 = vpop.permute.xlu2 %773 }
 0x286   : >>> { %v778_v41 = vsel %vm777_vm0, %v754_v40, %v774_v39 }
 0x287   : >>> { %780 = vst [vmem:[%s750_s27] sm:$0x1f] %v778_v41  ;;  %s381_s27 = smov (%p454_p9), [#allocation13] }
 0x28e   : >>> { %v839_v42 = vld [vmem:[%s1951_s14] ss:$0 sm:$0xff]  ;;  %v1547_v44 = vld [vmem:[%s1951_s14 + $0x4] ss:$0 sm:$0xff] }
 0x28f   : >>> { %v1546_v43 = vld [vmem:[%s1951_s14 - $0x1] sm:$0x1e] }
 0x290   : >>> { %v846_v45 = vsel %vm821_vm10, %v839_v42, %v1546_v43 }
 0x291   : >>> { %849 = vst [vmem:[%s1951_s14] sm:$0x1f] %v846_v45 }
 0x293   : >>> { %v757_v46 = vpop.permute.xlu1 %756 }
 0x294   : >>> { %v785_v48 = vpop.permute.xlu0 %784  ;;  %v761_v52 = vsel %vm760_vm1, %v755_v32, %v757_v46 }
 0x295   : >>> { %v797_v49 = vsel %vm764_vm3, %v785_v48, %v793_v47 }
 0x296   : >>> { %v803_v50 = vsel %vm1411_vm2, %v797_v49, 0.0 }
 0x297   : >>> { %811 = vst [vmem:[%s1941_s29] sm:$0x1f] %v803_v50  ;;  %s362_s29 = smov (%p454_p9), [#allocation12] }
 0x29b   : >>> { %v753_v53 = vpop.permute.xlu1 %752 }
 0x29c   : >>> { %v765_v54 = vsel %vm764_vm3, %v753_v53, %v761_v52 }
 0x29d   : >>> { %v771_v55 = vsel %vm1411_vm2, %v765_v54, 0.0 }
 0x29e   : >>> { %779 = vst [vmem:[%s1937_s11] sm:$0x1f] %v771_v55  ;;  %v1545_v57 = vld [vmem:[%s814_s21 + $0x1] sm:$0xf]  ;;  %v826_v0 = vld [vmem:[%s814_s21] ss:$0 sm:$0xff]  ;;  %s838_s11 = smov [#allocation15] }
 0x2a3   : >>> { %v806_v56 = vpop.permute.xlu1 %805 }
 0x2a4   : >>> { %v810_v58 = vsel %vm777_vm0, %v786_v51, %v806_v56 }
 0x2a5   : >>> { %v815_v59 = vld [vmem:[%s813_s20] ss:$0 sm:$0xff]  ;;  %v1543_v61 = vld [vmem:[%s813_s20 + $0x4] ss:$0 sm:$0xff]  ;;  %812 = vst [vmem:[%s1939_s28] sm:$0x1f] %v810_v58  ;;  %s937_s28 = sadd.s32 (%p454_p9), 1, %s1665_s16  }
 0x2a6   : >>> { %v1542_v60 = vld [vmem:[%s813_s20 - $0x1] sm:$0x1e]  ;;  %v834_v63 = vsel %vm833_vm11, %v1543_v61, %v1545_v57  ;;  %p450_p10 = scmp.ge.s32.totalorder (%p454_p9), %s937_s28, 15  ;;  %s2069_s16 = smov (%p454_p9), %s937_s28 }
 0x2a7   : >>> { %v822_v62 = vsel %vm821_vm10, %v815_v59, %v1542_v60  ;;  %836 = vst [vmem:[%s814_s21] sm:$0x1f] %v834_v63 }
 0x2a8   : >>> { %825 = vst [vmem:[%s813_s20] sm:$0x1f] %v822_v62 }
 0x2a9   : >>> { %1544 = vst [vmem:[%s813_s20 + $0x1] sm:$0x1] %v826_v0 }
 0x2ac   : >>> { %v850_v1 = vld [vmem:[%s838_s11] ss:$0 sm:$0xff]  ;;  %v1549_v2 = vld [vmem:[%s838_s11 + $0x1] sm:$0xf] }
 0x2ad   : >>> { %1548 = vst [vmem:[%s1951_s14 + $0x1] sm:$0x1] %v850_v1  ;;  %v858_v3 = vsel %vm833_vm11, %v1547_v44, %v1549_v2  ;;  %456 = sbr.rel (!%p454_p9) target bundleno = 248 (0xf8), region = 494  ;;  %s415_s14 = smov (%p454_p9), [#allocation15] }
 0x2ae   : >>> { %860 = vst [vmem:[%s838_s11] sm:$0x1f] %v858_v3  ;;  %v404_v10 = vld [vmem:[%s398_s22] sm:$0x1f] (%p454_p9) }
 0x2af   : >> { %v405_v14 = vsel (%p454_p9), %vm1411_vm2, %v404_v10, 0.0 }
 0x2b0   : >> { %v368_v4 = vld [vmem:[%s362_s29] sm:$0x1f] (%p454_p9)  ;;  %v406_v16 = vmul.f32 (%p454_p9), %v405_v14, %v405_v14 }
 0x2b1   : >> { %v369_v8 = vsel (%p454_p9), %vm1411_vm2, %v368_v4, 0.0 }
 0x2b2   : >> { %v370_v12 = vmul.f32 %v369_v8, %v369_v8 }
 0x2b4   : >> { %v387_v7 = vld [vmem:[%s381_s27] sm:$0x1f]  ;;  %v374_v19 = vsel %vm373_vm4, 0.0, %v370_v12 }
 0x2b5   : >> { %v388_v9 = vsel %vm1411_vm2, %v387_v7, 0.0  ;;  %v421_v11 = vld [vmem:[%s415_s14] sm:$0x1f] }
 0x2b6   : >> { %v389_v13 = vmul.f32 %v388_v9, %v388_v9  ;;  %v422_v15 = vsel %vm1411_vm2, %v421_v11, 0.0 }
 0x2b7   : >> { %v423_v18 = vmul.f32 %v422_v15, %v422_v15 }
 0x2b8   : >> { %v391_v17 = vadd.f32 %v389_v13, %v370_v12  ;;  %v390_v21 = vadd.f32 %v389_v13, %v374_v19 }
 0x2b9   : >> { %v427_v24 = vsel %vm426_vm5, 0.0, %v423_v18 }
 0x2ba   : >> { %v408_v20 = vadd.f32 %v406_v16, %v391_v17  ;;  %v407_v23 = vadd.f32 %v406_v16, %v390_v21 }
 0x2bc   : >> { %v429_v22 = vadd.f32 %v423_v18, %v408_v20  ;;  %v428_v25 = vadd.f32 %v427_v24, %v407_v23 }
 0x2be   : >> { %430 = vadd.xlane.f32.xlu0 %v429_v22 }
 0x2c6   : >> { %438 = vadd.xlane.f32.xlu0 %v428_v25 }
 0x331   : >> { %v431_v26 = vpop.xlane.xlu0 %430 }
 0x332   : >> { %v432_v27 = vrot.slane %v431_v26, 4 }
 0x334   : >> { %v433_v28 = vadd.f32 %v432_v27, %v431_v26 }
 0x336   : >> { %v434_v29 = vrot.slane %v433_v28, 2 }
 0x338   : >> { %v435_v33 = vadd.f32 %v434_v29, %v433_v28 }
 0x339   : >> { %v439_v30 = vpop.xlane.xlu0 %438 }
 0x33a   : >> { %v440_v31 = vrot.slane %v439_v30, 4  ;;  %v436_v36 = vrot.slane %v435_v33, 1 }
 0x33c   : >> { %v441_v32 = vadd.f32 %v440_v31, %v439_v30  ;;  %v437_v39 = vadd.f32 %v436_v36, %v435_v33 }
 0x33e   : >> { %v442_v34 = vrot.slane %v441_v32, 2 }
 0x340   : >> { %v443_v35 = vadd.f32 %v442_v34, %v441_v32 }
 0x342   : >> { %v444_v37 = vrot.slane %v443_v35, 1 }
 0x344   : >> { %v445_v38 = vadd.f32 %v444_v37, %v443_v35 }
 0x346   : >> { %1576 = vpush %v445_v38 }
 0x347   : >> { %1578 = vpush %v437_v39 }
 0x377   : >> { %s1577_s17 = spop %1576 }
 0x378   : >> { %s1579_s21 = spop %1578 }
 0x379   : >> { %s448_s20 = smul.f32 1e-10, %s1579_s21 }
 0x37b   : >> { %p449_p11 = scmp.le.f32.partialorder %s1577_s17, %s448_s20 }
 0x37d   : >> { %p451_p12 = por %p450_p10, %p449_p11 }
 0x37f   : > { %939 = sbr.rel (!%p451_p12) target bundleno = 247 (0xf7), region = 505 }
 0x384 PF: > { %s944_s11 = smov [#allocation12]  ;;  %v948_v5 = vmov %v1781_v5  ;;  %v951_v6 = vmov %v1783_v6  ;;  %s964_s29 = smov [#allocation15] }
 0x385   : > { %v968_v5 = vmov %v1781_v5  ;;  %v971_v6 = vmov %v1783_v6  ;;  %v952_v40 = vld [vmem:[%s944_s11] sm:$0x1f]  ;;  %vm955_vm6 = vcmp.eq.s32.totalorder %v951_v6, %v948_v5  ;;  %s940_s16 = sand.u32 7, %s1740_s12   ;;  %s1023_s22 = sshrl.u32 (%p1754_p3), %s1740_s12, 3 }
 0x386   : > { %vm975_vm7 = vcmp.eq.s32.totalorder %v971_v6, %v968_v5  ;;  %v956_v41 = vsel %vm955_vm6, %v952_v40, 0.0  ;;  %v972_v43 = vld [vmem:[%s964_s29] sm:$0x1f]  ;;  %s941_s28 = scalar_lea.vmem [#allocation4], %s940_s16  ;;  %s943_s27 = scalar_lea.vmem [#allocation6], %s940_s16 }
 0x387   : > { %v957_v42 = vrot.slane %v956_v41, 4  ;;  %v976_v44 = vsel %vm975_vm7, %v972_v43, 0.0  ;;  %s945_s28 = smov %s941_s28  ;;  %s965_s27 = smov %s943_s27 }
 0x388   : > { %v977_v46 = vrot.slane %v976_v44, 4  ;;  %s1564_s14 = sshll.u32 (%p1754_p3), %s1023_s22, 1 }
 0x389   : > { %v958_v45 = vadd.f32 %v957_v42, %v956_v41  ;;  %s1025_s20 = scalar_lea.vmem (%p1754_p3), %s2061_s4, %s1564_s14 }
 0x38a   : > { %v978_v48 = vadd.f32 %v977_v46, %v976_v44 }
 0x38b   : > { %v959_v47 = vrot.slane %v958_v45, 2 }
 0x38c   : > { %v979_v50 = vrot.slane %v978_v48, 2 }
 0x38d   : > { %v960_v49 = vadd.f32 %v959_v47, %v958_v45 }
 0x38e   : > { %v980_v52 = vadd.f32 %v979_v50, %v978_v48 }
 0x38f   : > { %v961_v51 = vrot.slane %v960_v49, 1 }
 0x390   : > { %v981_v5 = vrot.slane %v980_v52, 1 }
 0x391   : > { %v962_v53 = vadd.f32 %v961_v51, %v960_v49 }
 0x392   : > { %v982_v6 = vadd.f32 %v981_v5, %v980_v52 }
 0x393   : > { %963 = vst [vmem:[%s945_s28] sm:$0x1] %v962_v53 }
 0x394   : > { %983 = vst [vmem:[%s965_s27] sm:$0x1] %v982_v6 }
 0x398   : > { %1022 = sbr.rel (!%p1754_p3) target bundleno = 932 (0x3a4), region = 174 }
 0x39a   : > { %v986_v54 = vld [vmem:[#allocation4] sm:$0x3] }
 0x39b   : > { %989 = vst [vmem:[%s287_s25] sm:$0x3] %v986_v54  ;;  %v992_v55 = vld [vmem:[#allocation6] sm:$0x3] }
 0x39c   : > { %995 = vst [vmem:[%s293_s26] sm:$0x3] %v992_v55 }
 0x3a2   : > { %v1042_v56 = vld [vmem:[%s287_s25] sm:$0x3] }
 0x3a3   : > { %1043 = vst [vmem:[%s1025_s20] sm:$0x3] %v1042_v56 }
 0x3a4 PF: > { %1061 = sbr.rel (!%p1754_p3) target bundleno = 940 (0x3ac), region = 208  ;;  %s1062_s11 = sshrl.u32 (%p1754_p3), %s1740_s12, 3 }
 0x3a5   : > { %s1565_s29 = sshll.u32 (%p1754_p3), %s1062_s11, 1 }
 0x3a6   : > { %s1064_s25 = scalar_lea.vmem (%p1754_p3), %s2062_s5, %s1565_s29 }
 0x3aa   : > { %v1081_v57 = vld [vmem:[%s293_s26] sm:$0x3] }
 0x3ab   : > { %1082 = vst [vmem:[%s1064_s25] sm:$0x3] %v1081_v57 }
 0x3ac PF: > { %s1566_s27 = sshll.u32 %s1740_s12, 3  ;;  %v1128_v58 = vld [vmem:[%s1788_s30] sm:$0xff]  ;;  %v1163_v59 = vld [vmem:[%s1793_s15] sm:$0xff] }
 0x3ad   : > { %s1099_s18 = scalar_lea.vmem %s2063_s6, %s1566_s27  ;;  %s1134_s17 = scalar_lea.vmem %s2064_s7, %s1566_s27  ;;  %v1198_v60 = vld [vmem:[%s1801_s23] sm:$0xff]  ;;  %v1233_v61 = vld [vmem:[%s1805_s24] sm:$0xff] }
 0x3ae   : > { %1129 = vst [vmem:[%s1099_s18] sm:$0xff] %v1128_v58  ;;  %s1169_s11 = scalar_lea.vmem %s2065_s8, %s1566_s27  ;;  %s1204_s12 = scalar_lea.vmem %s2066_s9, %s1566_s27 }
 0x3af   : > { %1164 = vst [vmem:[%s1134_s17] sm:$0xff] %v1163_v59 }
 0x3b0   : > { %1199 = vst [vmem:[%s1169_s11] sm:$0xff] %v1198_v60 }
 0x3b1   : > { %1234 = vst [vmem:[%s1204_s12] sm:$0xff] %v1233_v61 }
 0x3b2 PF: > { %s2070_s15 = sld [smem:[#allocation25_spill]]  ;;  %p13_p13 = scmp.ge.s32.totalorder %s1743_s13, 4  }
 0x3b3   : > { %s2071_s30 = smov %s1657_s10  ;;  %s2073_s11 = smov %s1743_s13 }
 0x3b4   :  { %15 = sbr.rel (!%p13_p13) target bundleno = 2 (0x2), region = 516 }
 0x3b8   : > { %s2072_s10 = smov %s2070_s15 }

// kernel: pca_template_map.1
= control target key start
LH: loop header
LB: loop body
LE: loop exit
PB: predicated region body
PF: predicated region fallthrough
CT: control target
= control target key end

     0   :  { %vm20_vm0 = vcmask 859136   ;;  %v277_v9 = vmov 4.0   ;;  %vm90_vm1 = vcmask 76800   ;;  %vm146_vm3 = vcmask 1043456   ;;  %s335_s1 = inlined_call_operand.vmem [shape: f32[10,361], index: 1, kind: input, shape index: {}]   ;;  %s336_s0 = inlined_call_operand.vmem [shape: f32[8,361], index: 0, kind: input, shape index: {}]   ;;  %s337_s2 = inlined_call_operand.vmem [shape: f32[2,10,10], index: 2, kind: output, shape index: {}]  }
   0x1   :  { %v14_v0 = vld [vmem:[%s335_s1 + $0x18] sm:$0x3]  ;;  %v16_v1 = vld [vmem:[%s335_s1 + $0x28] sm:$0x3]  ;;  %v11_v2 = vld [vmem:[%s335_s1] sm:$0xff]  ;;  %275 = vrcp.f32 %v277_v9  ;;  %vm139_vm4 = vcmask 31744  }
   0x2   :  { %44 = vmatpush.xpose.msra.mxu1 %v14_v0  ;;  %262 = vmatpush.xpose.msk.msra.mxu2 %vm20_vm0, %v16_v1  ;;  %v13_v3 = vld [vmem:[%s335_s1 + $0x10] sm:$0xff]  ;;  %v15_v4 = vld [vmem:[%s335_s1 + $0x20] sm:$0x3]  ;;  %v12_v7 = vld [vmem:[%s335_s1 + $0x8] sm:$0xff]  ;;  %vm173_vm5 = vcmask 80896   ;;  %vm175_vm6 = vcmask 74752  }
   0x3   :  { %v17_v5 = vld [vmem:[%s336_s0] sm:$0xff]  ;;  %v19_v6 = vld [vmem:[%s336_s0 + $0x10] sm:$0xff]  ;;  %v18_v8 = vld [vmem:[%s336_s0 + $0x8] sm:$0xff] }
   0x6   :  { %45 = vmatpush.xpose.msra.mxu1 %v11_v2  ;;  %263 = vmatpush.xpose.msk.msra.mxu2 %vm20_vm0, %v13_v3 }
   0x7   :  { %v276_v11 = vpop.eup %275 }
   0x8   :  { %v99_v12 = vmul.f32 4.0, %v276_v11  ;;  %vm103_vm2 = vweird.f32 %v276_v11 }
   0x9   :  { %46 = vmatmul.f32.vlgmr.msra.gmra.mxu1 %v17_v5  ;;  %264 = vmatmul.msk.f32.vlgmr.msra.gmra.mxu2 %vm20_vm0, %v19_v6 }
   0xa   :  { %64 = vmatpush.xpose.msrb.mxu1 %v15_v4  ;;  %v100_v17 = vsub.f32 1.0, %v99_v12 }
   0xc   :  { %v101_v22 = vmul.f32 %v276_v11, %v100_v17 }
   0xe   :  { %65 = vmatpush.xpose.msrb.mxu1 %v12_v7  ;;  %v102_v27 = vadd.f32 %v276_v11, %v101_v22 }
  0x10   :  { %v104_v32 = vsel %vm103_vm2, %v276_v11, %v102_v27 }
  0x11   :  { %66 = vmatmul.f32.vlgmr.msrb.gmra.mxu1 %v18_v8 }
  0x86   :  { %v47_v10 = vpop.f32.mrf.mxu1 }
  0x8c   :  { %v87_v14 = vpop.f32.mrf.mxu2 }
  0x8e   :  { %v67_v13 = vpop.f32.mrf.mxu1 }
  0x8f   :  { %v68_v15 = vadd.f32 %v67_v13, %v47_v10 }
  0x91   :  { %v88_v16 = vadd.f32 %v87_v14, %v68_v15 }
  0x93   :  { %v91_v18 = vsel %vm90_vm1, %v88_v16, 0.0  ;;  %v178_v19 = vrot.slane %v88_v16, 4 }
  0x94   :  { %v92_v20 = vrot.slane %v91_v18, 4 }
  0x95   :  { %v180_v21 = vsel %vm90_vm1, %v178_v19, 0.0 }
  0x96   :  { %v181_v23 = vrot.slane %v180_v21, 4  ;;  %v93_v24 = vadd.f32 %v92_v20, %v91_v18 }
  0x98   :  { %v94_v25 = vrot.slane %v93_v24, 2  ;;  %v182_v26 = vadd.f32 %v181_v23, %v180_v21 }
  0x9a   :  { %v95_v28 = vadd.f32 %v94_v25, %v93_v24  ;;  %v183_v29 = vrot.slane %v182_v26, 2 }
  0x9c   :  { %v96_v30 = vrot.slane %v95_v28, 1  ;;  %v184_v31 = vadd.f32 %v183_v29, %v182_v26 }
  0x9e   :  { %v97_v33 = vadd.f32 %v96_v30, %v95_v28  ;;  %v185_v34 = vrot.slane %v184_v31, 1 }
  0xa0   :  { %v105_v35 = vmul.f32 %v104_v32, %v97_v33  ;;  %v186_v36 = vadd.f32 %v185_v34, %v184_v31 }
  0xa2   :  { %v106_v37 = vsub.f32 %v88_v16, %v105_v35  ;;  %v187_v38 = vmul.f32 %v186_v36, %v104_v32 }
  0xa4   :  { %107 = vxpose.xlu0.b32.start.end [1/1] (short) (narrow) %v106_v37, 16  ;;  %265 = vmatpush.msk.msra.mxu3 %vm146_vm3, %v106_v37  ;;  %v188_v39 = vsub.f32 %v88_v16, %v187_v38 }
  0xa6   :  { %v190_v40 = vrot.slane %v188_v39, 4 }
  0xa8   :  { %268 = vmatpush.msk.msra.mxu0 %vm146_vm3, %v190_v40 }
  0xb4   :  { %192 = vxpose.xlu0.b32.start.end [1/1] (short) (narrow) %v190_v40, 16 }
 0x148   :  { %v123_v41 = vpop.trf.xlu0 }
 0x149   :  { %266 = vmatmul.msk.f32.vlgmr.msra.gmra.mxu3 %vm139_vm4, %v123_v41 }
 0x150   :  { %v124_v42 = vpop.trf.xlu0 }
 0x151   :  { %267 = vmatmul.msk.f32.gmra.mxu3 %vm139_vm4, %v124_v42 }
 0x158   :  { %v208_v43 = vpop.trf.xlu0 }
 0x159   :  { %269 = vmatmul.msk.f32.vlgmr.msra.gmra.mxu0 %vm139_vm4, %v208_v43 }
 0x160   :  { %v209_v44 = vpop.trf.xlu0 }
 0x161   :  { %270 = vmatmul.msk.f32.gmra.mxu0 %vm139_vm4, %v209_v44 }
 0x1cc   :  { %v167_v45 = vpop.f32.mrf.mxu3 }
 0x1cd   :  { %174 = vst.msk [vmem:[%s337_s2] sm:$0xff] %vm173_vm5, %v167_v45 }
 0x1d4   :  { %v170_v46 = vpop.f32.mrf.mxu3 }
 0x1d5   :  { %176 = vst.msk [vmem:[%s337_s2 + $0x8] sm:$0x3] %vm175_vm6, %v170_v46 }
 0x1d6   :  { %v249_v47 = vpop.f32.mrf.mxu0 }
 0x1d7   :  { %271 = vst.msk [vmem:[%s337_s2 + $0x10] sm:$0xff] %vm173_vm5, %v249_v47 }
 0x1de   :  { %v252_v48 = vpop.f32.mrf.mxu0 }
 0x1df   :  { %272 = vst.msk [vmem:[%s337_s2 + $0x18] sm:$0x3] %vm175_vm6, %v252_v48 }

</bundles_post_ra>
